<compile_context>
chip_gen: v7x
topology: tpu7x:2x2x1
jax: 0.10.0
libtpu: 0.0.40
codegen_flags: <defaults>
</compile_context>

<pallas_src>
import functools

import jax
import jax.numpy as jnp
from jax.experimental import pallas as pl
from jax.experimental.pallas import tpu as pltpu

_NEG_SLOPE = 0.01     # nn.LeakyReLU default
_LANE = 128           # TPU lane width; pad output feature dim to a multiple of this
_BN_EPS = 1e-5        # nn.BatchNorm1d default


def _basic_block_kernel(x_ref, w_ref, shift_ref, o_ref, *, negative_slope):
    """o = leaky_relu(x @ W + shift), single full-block invocation."""
    # bf16 MXU inputs, f32 accumulation.
    x = x_ref[...].astype(jnp.bfloat16)
    y = jnp.dot(x, w_ref[...], preferred_element_type=jnp.float32)
    # Folded Linear bias + BatchNorm affine (f32 epilogue — v5e has no bf16 VPU path).
    y = y + shift_ref[...]
    # LeakyReLU.
    y = jnp.where(y >= 0.0, y, negative_slope * y)
    o_ref[...] = y.astype(o_ref.dtype)


def basic_block_forward(params, x):
    """x: [B, input_dim] f32 -> [B, output_dim] f32 (eval-mode BasicBlock01 forward)."""
    w = params["w_folded"]          # [Din, Dpad] bf16, BN scale folded in, zero-padded cols
    shift = params["shift"]         # [1, Dpad]   f32
    out_dim = params["output_dim"]

    B, Din = x.shape
    Dpad = w.shape[1]

    kernel = functools.partial(_basic_block_kernel, negative_slope=_NEG_SLOPE)
    flops = 2 * B * Din * Dpad
    bytes_accessed = (x.size * 4) + (w.size * 2) + (shift.size * 4) + (B * Dpad * 4)

    out_padded = pl.pallas_call(
        kernel,
        out_shape=jax.ShapeDtypeStruct((B, Dpad), jnp.float32),
        grid=(1,),
        in_specs=[
            pl.BlockSpec((B, Din), lambda i: (0, 0)),
            pl.BlockSpec((Din, Dpad), lambda i: (0, 0)),
            pl.BlockSpec((1, Dpad), lambda i: (0, 0)),
        ],
        out_specs=pl.BlockSpec((B, Dpad), lambda i: (0, 0)),
        compiler_params=pltpu.CompilerParams(
            dimension_semantics=("arbitrary",)
        ),
        cost_estimate=pl.CostEstimate(
            flops=flops, transcendentals=0, bytes_accessed=bytes_accessed
        ),
    )(x, w, shift)

    return out_padded[:, :out_dim]


def init_basic_block01_params(key, input_dim, output_dim):
    """Deterministic synthetic parameters, pre-folded for the fused kernel."""
    kw, kb, kg, kbe, km, kv = jax.random.split(key, 6)
    # nn.Linear weight stored pre-transposed as [in, out] so the kernel computes x @ W.
    w = jax.random.normal(kw, (input_dim, output_dim), jnp.float32) * 0.05
    b = jax.random.normal(kb, (output_dim,), jnp.float32) * 0.05
    gamma = jax.random.normal(kg, (output_dim,), jnp.float32) * 0.1 + 1.0
    beta = jax.random.normal(kbe, (output_dim,), jnp.float32) * 0.1
    running_mean = jax.random.normal(km, (output_dim,), jnp.float32) * 0.1
    running_var = jax.random.uniform(kv, (output_dim,), jnp.float32, 0.5, 1.5)

    # Fold BN (running stats) into the linear:
    #   bn(xW + b) = (xW + b - mu) * gamma/sqrt(var+eps) + beta
    #             = x (W * s)      + ((b - mu) * s + beta),   s = gamma/sqrt(var+eps)
    s = gamma / jnp.sqrt(running_var + _BN_EPS)
    w_folded = w * s[None, :]                       # scale folded into weight columns
    shift = (b - running_mean) * s + beta           # per-channel additive term

    # Pad output feature dim to a multiple of 128 for lane-dense stores.
    d_pad = ((output_dim + _LANE - 1) // _LANE) * _LANE
    pad = d_pad - output_dim
    if pad:
        w_folded = jnp.pad(w_folded, ((0, 0), (0, pad)))
        shift = jnp.pad(shift, ((0, pad),))

    return dict(
        w_folded=w_folded.astype(jnp.bfloat16),     # bf16 MXU feed (one-time param prep)
        shift=shift.reshape(1, d_pad).astype(jnp.float32),
        output_dim=output_dim,
    )


if __name__ == "__main__":
    # Small shapes consistent with the module's constructor parameters.
    batch = 8
    input_dim = 64
    output_dim = 32

    key = jax.random.PRNGKey(0)
    key, kx = jax.random.split(key)
    x = jax.random.normal(kx, (batch, input_dim), jnp.float32)

    params = init_basic_block01_params(key, input_dim, output_dim)

    out = basic_block_forward(params, x)
    out = jax.block_until_ready(out)
    assert out.shape == (batch, output_dim), out.shape
    print("KERNEL_OK")
</pallas_src>

<mosaic_0001>
module attributes {stable_mosaic.version = 11 : i64} {
  func.func @_basic_block_kernel(%arg0: i32, %arg1: memref<8x64xf32, #tpu.memory_space<vmem>>, %arg2: memref<64x128xbf16, #tpu.memory_space<vmem>>, %arg3: memref<1x128xf32, #tpu.memory_space<vmem>>, %arg4: memref<8x128xf32, #tpu.memory_space<vmem>>) attributes {dimension_semantics = [#tpu.dimension_semantics<arbitrary>], iteration_bounds = array<i64: 1>, scalar_prefetch = 0 : i64, scratch_operands = 0 : i64, tpu.core_type = #tpu.core_type<tc>, window_params = [{pipeline_mode = #tpu.pipeline_mode<synchronous>, transform_indices = @transform_0, window_bounds = array<i64: 8, 64>}, {pipeline_mode = #tpu.pipeline_mode<synchronous>, transform_indices = @transform_1, window_bounds = array<i64: 64, 128>}, {pipeline_mode = #tpu.pipeline_mode<synchronous>, transform_indices = @transform_2, window_bounds = array<i64: 1, 128>}, {pipeline_mode = #tpu.pipeline_mode<synchronous>, transform_indices = @transform_3, window_bounds = array<i64: 8, 128>}]} {
    %c0 = arith.constant 0 : index
    %c0_0 = arith.constant 0 : index
    %0 = vector.load %arg1[%c0, %c0_0] : memref<8x64xf32, #tpu.memory_space<vmem>>, vector<8x64xf32>
    %1 = arith.truncf %0 : vector<8x64xf32> to vector<8x64xbf16>
    %c0_1 = arith.constant 0 : index
    %c0_2 = arith.constant 0 : index
    %2 = vector.load %arg2[%c0_1, %c0_2] : memref<64x128xbf16, #tpu.memory_space<vmem>>, vector<64x128xbf16>
    %cst = arith.constant dense<0.000000e+00> : vector<8x128xf32>
    %3 = tpu.matmul %1, %2, %cst {dimension_numbers = #tpu.dot_dimension_numbers<[1], [0], [0], [1], [0, 0, 1, 1], [], []>} : vector<8x64xbf16>, vector<64x128xbf16>, vector<8x128xf32> -> vector<8x128xf32>
    %c0_3 = arith.constant 0 : index
    %c0_4 = arith.constant 0 : index
    %4 = vector.load %arg3[%c0_3, %c0_4] : memref<1x128xf32, #tpu.memory_space<vmem>>, vector<1x128xf32>
    %5 = vector.broadcast %4 : vector<1x128xf32> to vector<8x128xf32>
    %6 = arith.addf %3, %5 : vector<8x128xf32>
    %cst_5 = arith.constant 0.000000e+00 : f32
    %7 = vector.broadcast %cst_5 : f32 to vector<8x128xf32>
    %8 = arith.cmpf oge, %6, %7 : vector<8x128xf32>
    %cst_6 = arith.constant 0.00999999977 : f32
    %9 = vector.broadcast %cst_6 : f32 to vector<8x128xf32>
    %10 = arith.mulf %9, %6 : vector<8x128xf32>
    %11 = arith.select %8, %6, %10 : vector<8x128xi1>, vector<8x128xf32>
    %c0_7 = arith.constant 0 : index
    %c0_8 = arith.constant 0 : index
    %12 = vector.load %arg4[%c0_7, %c0_8] : memref<8x128xf32, #tpu.memory_space<vmem>>, vector<8x128xf32>
    tpu.vector_store %arg4[%c0_7, %c0_8], %11 {strides = array<i32>} : memref<8x128xf32, #tpu.memory_space<vmem>>, vector<8x128xf32>,
    return
  }
  func.func @transform_0(%arg0: i32) -> (i32, i32) {
    %c0_i32 = arith.constant 0 : i32
    %c0_i32_0 = arith.constant 0 : i32
    %c0_i32_1 = arith.constant 0 : i32
    return %c0_i32, %c0_i32_0 : i32, i32
  }
  func.func @transform_1(%arg0: i32) -> (i32, i32) {
    %c0_i32 = arith.constant 0 : i32
    %c0_i32_0 = arith.constant 0 : i32
    %c0_i32_1 = arith.constant 0 : i32
    return %c0_i32, %c0_i32_0 : i32, i32
  }
  func.func @transform_2(%arg0: i32) -> (i32, i32) {
    %c0_i32 = arith.constant 0 : i32
    %c0_i32_0 = arith.constant 0 : i32
    %c0_i32_1 = arith.constant 0 : i32
    return %c0_i32, %c0_i32_0 : i32, i32
  }
  func.func @transform_3(%arg0: i32) -> (i32, i32) {
    %c0_i32 = arith.constant 0 : i32
    %c0_i32_0 = arith.constant 0 : i32
    %c0_i32_1 = arith.constant 0 : i32
    return %c0_i32, %c0_i32_0 : i32, i32
  }
}

</mosaic_0001>

<bundles_post_ra>
// kernel: tpu_custom_call.1
= control target key start
LH: loop header
LB: loop body
LE: loop exit
PB: predicated region body
PF: predicated region fallthrough
CT: control target
= control target key end

     0   :  { %8 = vsyncpa [#allocation3], 0  ;;  %s326_s0 = inlined_call_operand.hbm [shape: f32[8,64], index: 0, kind: input, shape index: {}]   ;;  %s327_s1 = inlined_call_operand.hbm [shape: bf16[64,128], index: 1, kind: input, shape index: {}]   ;;  %s328_s2 = inlined_call_operand.vmem [shape: f32[1,128], index: 2, kind: input, shape index: {}]   ;;  %s329_s3 = inlined_call_operand.hbm [shape: f32[8,128], index: 3, kind: output, shape index: {}]  }
   0x1   :  { %9 = vsyncpa [#allocation6], 0 }
   0x2   :  { %10 = vsyncpa [#allocation4], 0  ;;  %s253_s12 = smov [#allocation2]   ;;  %s254_s14 = smov [#allocation5]  }
   0x3   :  { %s17_s13 = sshll.u32 %s253_s12, 4  ;;  %s26_s15 = sshll.u32 %s254_s14, 4  ;;  %s18_s13 = int_to_ptr.vmem [resolvable:$true] %s17_s13  ;;  %s280_s15 = int_to_ptr.vmem [resolvable:$true] %s26_s15 }
   0x4   :  { %s181_s18 = scalar_lea.hbm %s326_s0, 128 }
   0x5   :  { %p182_p0 = scmp.ne.s32.totalorder %s326_s0, %s181_s18  ;;  %p185_p1 = scmp.lt.u32.totalorder %s181_s18, %s326_s0 }
   0x7   :  { %p187_p2 = pnand %p185_p1, %p182_p0 }
   0x9   :  { %190 = shalt.err (!%p187_p2)
}
   0xa   :  { %s191_s23 = scalar_lea.vmem %s18_s13, 128  ;;  %p196_p4 = scmp.lt.s32.totalorder %s18_s13, %s18_s13 }
   0xb   :  { %p192_p3 = scmp.ne.s32.totalorder %s18_s13, %s191_s23  ;;  %p197_p5 = scmp.lt.s32.totalorder %s191_s23, %s191_s23 }
   0xd   :  { %p198_p6 = por %p197_p5, %p196_p4 }
   0xf   :  { %p199_p7 = pnand %p198_p6, %p192_p3 }
  0x11   :  { %202 = shalt.err (!%p199_p7)
}
  0x12   :  { %20 = dma.hbm_to_vmem [thread:$0]  %s326_s0, 128, %s18_s13, [#allocation3]  }
  0x13   :  { %s203_s28 = scalar_lea.hbm %s327_s1, 512 }
  0x14   :  { %p204_p8 = scmp.ne.s32.totalorder %s327_s1, %s203_s28  ;;  %p207_p9 = scmp.lt.u32.totalorder %s203_s28, %s327_s1 }
  0x16   :  { %p209_p10 = pnand %p207_p9, %p204_p8 }
  0x18   :  { %212 = shalt.err (!%p209_p10)
}
  0x19   :  { %s213_s6 = scalar_lea.vmem %s280_s15, 512  ;;  %p218_p12 = scmp.lt.s32.totalorder %s280_s15, %s280_s15 }
  0x1a   :  { %p214_p11 = scmp.ne.s32.totalorder %s280_s15, %s213_s6  ;;  %p219_p13 = scmp.lt.s32.totalorder %s213_s6, %s213_s6 }
  0x1c   :  { %p220_p0 = por %p219_p13, %p218_p12 }
  0x1e   :  { %p221_p1 = pnand %p220_p0, %p214_p11 }
  0x20   :  { %224 = shalt.err (!%p221_p1)
}
  0x21   :  { %s255_s0 = smov 64   ;;  %s256_s7 = smov 4  }
  0x22   :  { %32 = dma.hbm_to_vmem [thread:$0]  %s327_s1, 512, %s280_s15, [#allocation6], %s255_s0, %s255_s0, %s256_s7  }
  0x23   :  { %247 = dma.done.wait [#allocation3], 128  }
  0x24   :  { %248 = vsyncadd [#allocation3], 4294967168 }
  0x25   :  { %249 = dma.done.wait [#allocation6], 512  }
  0x26   :  { %250 = vsyncadd [#allocation6], 4294966784  ;;  %v257_v0 = vmov 0.0   ;;  %vm258_vm0 = vmmov 0   ;;  %v177_v1 = vld [vmem:[#allocation5] sm:$0xff]   ;;  %v178_v2 = vld [vmem:[#allocation5 + $0x8] sm:$0xff]  }
  0x27   :  { %158 = vmatprep.subr.bf16.mxu0 %v257_v0  ;;  %166 = vmatprep.mubr.msk.bf16.mxu0 %vm258_vm0, %v257_v0  ;;  %v179_v3 = vld [vmem:[#allocation5 + $0x10] sm:$0xff]   ;;  %v180_v4 = vld [vmem:[#allocation5 + $0x18] sm:$0xff]   ;;  %vm83_vm1 = vcmask 523264   ;;  %s259_s11 = smov [#allocation7]  }
  0x28   :  { %159 = vmatpush3.bf16.msra.mxu0 %v177_v1  ;;  %v42_v5 = vld [vmem:[#allocation2] sm:$0xff]  ;;  %s137_s12 = sshll.u32 %s259_s11, 4  ;;  %s138_s12 = int_to_ptr.vmem [resolvable:$true] %s137_s12 }
  0x29   :  { %160 = vmatprep.subr.bf16.mxu0 %v257_v0  ;;  %v43_v6 = vpack.c.bf16 %v42_v5, %v42_v5  ;;  %v147_v7 = vld [vmem:[%s328_s2] ss:$0 sm:$0xff]  ;;  %s225_s13 = scalar_lea.vmem %s138_s12, 128  ;;  %p230_p3 = scmp.lt.s32.totalorder %s138_s12, %s138_s12 }
  0x2a   :  { %p226_p2 = scmp.ne.s32.totalorder %s138_s12, %s225_s13  ;;  %p231_p4 = scmp.lt.s32.totalorder %s225_s13, %s225_s13 }
  0x2c   :  { %161 = vmatpush3.bf16.msra.mxu0 %v178_v2  ;;  %p232_p5 = por %p231_p4, %p230_p3 }
  0x2d   :  { %162 = vmatprep.subr.bf16.mxu0 %v257_v0 }
  0x2e   :  { %p233_p6 = pnand %p232_p5, %p226_p2 }
  0x30   :  { %163 = vmatpush3.bf16.msra.mxu0 %v179_v3 }
  0x31   :  { %164 = vmatprep.subr.bf16.mxu0 %v257_v0 }
  0x34   :  { %165 = vmatpush3.bf16.msra.mxu0 %v180_v4 }
  0x37   :  { %167 = vmatmul.mubr.msk.bf16.vlgmr.msra.gmra.mrb[0].mxu0 %vm83_vm1, %v43_v6 }
 0x10a   :  { %v121_v8 = vpop.f32.mrb[0].mxu0 }
 0x10b   :  { %v122_v9 = vadd.f32 %v147_v7, %v121_v8  ;;  %v168_v10 = vpop.f32.mrb[1].mxu0 }
 0x10c   :  { %v124_v11 = vpop.f32.mrb[2].mxu0 }
 0x10d   :  { %v128_v12 = vmul.f32 0.01, %v122_v9  ;;  %v169_v13 = vpop.f32.mrb[3].mxu0  ;;  %vm127_vm2 = vcmp.ge.f32.partialorder %v122_v9, 0.0 }
 0x10f   :  { %v129_v14 = vsel %vm127_vm2, %v122_v9, %v128_v12 }
 0x110   :  { %130 = vst [vmem:[#allocation7] sm:$0xff] %v129_v14 }
 0x111   :  { %236 = shalt.err (!%p233_p6)
}
 0x112   :  { %s237_s15 = scalar_lea.hbm %s329_s3, 128 }
 0x113   :  { %p238_p7 = scmp.ne.s32.totalorder %s329_s3, %s237_s15  ;;  %p241_p8 = scmp.lt.u32.totalorder %s237_s15, %s329_s3 }
 0x115   :  { %p243_p9 = pnand %p241_p8, %p238_p7 }
 0x117   :  { %246 = shalt.err (!%p243_p9)
}
 0x118   :  { %140 = dma.vmem_to_hbm [thread:$0]  %s138_s12, 128, %s329_s3, [#allocation4]  }
 0x119   :  { %251 = dma.done.wait [#allocation4], 128  }
 0x11a   :  { %252 = vsyncadd [#allocation4], 4294967168 }
 0x11b   :  { %144 = vsyncpa [#allocation3], 1 }
 0x11c   :  { %145 = vsyncpa [#allocation6], 1 }
 0x11d   :  { %146 = vsyncpa [#allocation4], 1 }

</bundles_post_ra>
